<compile_context>
chip_gen: v6e
topology: v6e:2x2x1
jax: 0.10.0
libtpu: 0.0.40
codegen_flags: <defaults>
</compile_context>

<pallas_src>
import functools

import jax
import jax.numpy as jnp
from jax import lax
from jax.experimental import pallas as pl
from jax.experimental.pallas import tpu as pltpu

LANE = 128                    # vreg lane width
SUBLANE = 8                   # f32 sublanes per vreg
ALIGN = SUBLANE * LANE        # 1024-element alignment of the kernel slab
DEFAULT_BLOCK_ROWS = 8192     # 8192 x 128 f32 = 4 MiB per operand per buffer
COMPUTE_CHUNK_ROWS = 1024     # in-kernel compute chunk (bounds temps ~512 KiB)
ACC_ROWS = 64                 # wide accumulator -> 8 independent vreg chains
VMEM_LIMIT_BYTES = 40 * 1024 * 1024   # explicit; headroom on v7x (64 MiB VMEM)


def _largest_divisor(n, candidates):
    for c in candidates:
        if n % c == 0:
            return c
    return 1


def _num_tensorcores():
    """Best-effort TensorCore count (2 on v7x, 1 on v5e/v6e); safe fallback 1."""
    try:
        info = pltpu.get_tpu_info()
        for attr in ("num_cores", "num_tensorcores", "tensorcores_per_chip",
                     "cores_per_chip"):
            v = getattr(info, attr, None)
            if isinstance(v, int) and v > 0:
                return v
    except Exception:
        pass
    try:
        v = getattr(jax.devices()[0], "num_cores", None)
        if isinstance(v, int) and v > 0:
            return v
    except Exception:
        pass
    return 1


def _dice_partials_kernel(x_ref, t_ref, out_ref, *, block_rows, chunk_rows,
                          acc_rows, full_blocks, n_valid):
    """Accumulate partial sums of sigmoid(x)*t and sigmoid(x)+t into the
    (1, 2, acc_rows, LANE) output block for this core-split."""
    c = pl.program_id(0)                 # core-split axis ("parallel")
    s = pl.program_id(1)                 # sequential reduction axis
    steps = pl.num_programs(1)
    blk = c * steps + s                  # intended (unclamped) global block idx
    block_elems = block_rows * LANE
    num_chunks = block_rows // chunk_rows
    folds = chunk_rows // acc_rows

    @pl.when(s == 0)
    def _init():
        out_ref[...] = jnp.zeros_like(out_ref)

    def _process_chunk(i, masked):
        off = i * chunk_rows
        if not isinstance(off, int):
            off = pl.multiple_of(off, chunk_rows)
        xv = x_ref[pl.ds(off, chunk_rows), :].astype(jnp.float32)
        tv = t_ref[pl.ds(off, chunk_rows), :].astype(jnp.float32)
        # sigmoid(x) == 0.5 * tanh(0.5 * x) + 0.5: one EUP op + cheap VPU fma
        # instead of exp + divide, keeping the EUP slot off the critical path.
        p = 0.5 * jnp.tanh(0.5 * xv) + 0.5
        if masked:
            # Mask by true element index so garbage rows of clipped/duplicated
            # tail tiles (possibly NaN) contribute exactly zero.
            r = lax.broadcasted_iota(jnp.int32, (chunk_rows, LANE), 0)
            l = lax.broadcasted_iota(jnp.int32, (chunk_rows, LANE), 1)
            remaining = n_valid - blk * block_elems - off * LANE
            valid = (r * LANE + l) < remaining
            p = jnp.where(valid, p, 0.0)
            tv = jnp.where(valid, tv, 0.0)
        # Fold (chunk_rows, LANE) -> (acc_rows, LANE): short independent add
        # chains (folds ~16) instead of one ~1000-long serial VALU chain.
        out_ref[0, 0] += jnp.sum((p * tv).reshape(folds, acc_rows, LANE), axis=0)
        out_ref[0, 1] += jnp.sum((p + tv).reshape(folds, acc_rows, LANE), axis=0)

    def _run(masked):
        if num_chunks == 1:
            _process_chunk(0, masked)
        else:
            def body(i, carry):
                _process_chunk(i, masked)
                return carry
            lax.fori_loop(0, num_chunks, body, 0)

    @pl.when(blk < full_blocks)
    def _full_tile():
        _run(masked=False)

    @pl.when(blk >= full_blocks)
    def _ragged_tile():
        _run(masked=True)


def dice_loss(inputs, targets, smooth=1e-5, max_block_rows=DEFAULT_BLOCK_ROWS):
    """Pallas TPU implementation of DiceLoss.forward (binary dice over logits).

    `targets` may stay in the narrowest dtype the producer has (bool / int8 /
    bf16); the kernel casts to f32 per tile, so no wrapper-side cast pass.
    """
    x = inputs.reshape(-1)
    t = targets.reshape(-1)
    n = x.shape[0]

    inter_tail = jnp.float32(0.0)
    total_tail = jnp.float32(0.0)

    if n < ALIGN:
        # Tiny input: pad up to one aligned slab (negligible); pad elements are
        # masked out in-kernel by true element index.
        pad = ALIGN - n
        x_main = jnp.pad(x, (0, pad))
        t_main = jnp.pad(t, (0, pad))
        n_valid = n
    else:
        n_main = (n // ALIGN) * ALIGN
        if n_main == n:
            x_main, t_main = x, t
        else:
            # Slice off the <1024-element ragged tail instead of a whole-array
            # pad; its contribution is added back in plain JAX below.
            x_main, t_main = x[:n_main], t[:n_main]
            p_tail = jax.nn.sigmoid(x[n_main:].astype(jnp.float32))
            t_tail = t[n_main:].astype(jnp.float32)
            inter_tail = jnp.sum(p_tail * t_tail)
            total_tail = jnp.sum(p_tail) + jnp.sum(t_tail)
        n_valid = n_main

    rows = x_main.shape[0] // LANE          # always a multiple of SUBLANE
    x2 = x_main.reshape(rows, LANE)
    t2 = t_main.reshape(rows, LANE)

    if rows >= COMPUTE_CHUNK_ROWS:
        max_br = max(COMPUTE_CHUNK_ROWS,
                     (max_block_rows // COMPUTE_CHUNK_ROWS) * COMPUTE_CHUNK_ROWS)
        block_rows = min(max_br, (rows // COMPUTE_CHUNK_ROWS) * COMPUTE_CHUNK_ROWS)
        chunk_rows = COMPUTE_CHUNK_ROWS
        acc_rows = ACC_ROWS
    else:
        block_rows = rows                   # single block, single chunk
        chunk_rows = rows
        acc_rows = _largest_divisor(rows, (ACC_ROWS, 32, 16, 8))

    num_blocks = pl.cdiv(rows, block_rows)
    splits = max(1, min(_num_tensorcores(), num_blocks))
    steps_per_core = pl.cdiv(num_blocks, splits)
    full_blocks = n_valid // (block_rows * LANE)   # blocks needing no tail mask

    def in_map(c, s):
        # Clamp so an over-provisioned last step re-reads a valid block; its
        # contribution is fully masked to zero inside the kernel.
        return (jnp.minimum(c * steps_per_core + s, num_blocks - 1), 0)

    kernel = functools.partial(
        _dice_partials_kernel,
        block_rows=block_rows, chunk_rows=chunk_rows, acc_rows=acc_rows,
        full_blocks=full_blocks, n_valid=n_valid)

    partials = pl.pallas_call(
        kernel,
        out_shape=jax.ShapeDtypeStruct((splits, 2, acc_rows, LANE), jnp.float32),
        grid_spec=pltpu.PrefetchScalarGridSpec(
            num_scalar_prefetch=0,
            grid=(splits, steps_per_core),
            in_specs=[
                pl.BlockSpec((block_rows, LANE), in_map),
                pl.BlockSpec((block_rows, LANE), in_map),
            ],
            out_specs=pl.BlockSpec((1, 2, acc_rows, LANE),
                                   lambda c, s: (c, 0, 0, 0)),
        ),
        compiler_params=pltpu.CompilerParams(
            dimension_semantics=("parallel", "arbitrary"),
            vmem_limit_bytes=VMEM_LIMIT_BYTES,
        ),
    )(x2, t2)

    # Tiny final reduction + dice formula on (splits, 2, acc_rows, 128) partials.
    intersection = jnp.sum(partials[:, 0]) + inter_tail
    total_area = jnp.sum(partials[:, 1]) + total_tail
    dice_coefficient = (2.0 * intersection + smooth) / (total_area + smooth)
    return 1.0 - dice_coefficient


def _dice_loss_ref(inputs, targets, smooth=1e-5):
    p = jax.nn.sigmoid(inputs.astype(jnp.float32)).reshape(-1)
    t = targets.astype(jnp.float32).reshape(-1)
    intersection = jnp.sum(p * t)
    total_area = jnp.sum(p) + jnp.sum(t)
    return 1.0 - (2.0 * intersection + smooth) / (total_area + smooth)


if __name__ == "__main__":
    key = jax.random.PRNGKey(0)
    k_x, k_t = jax.random.split(key)

    # NCHW logits and binary targets, matching the PyTorch usage.
    x = jax.random.normal(k_x, (2, 4, 16, 16), dtype=jnp.float32)
    t = jax.random.bernoulli(k_t, p=0.5, shape=(2, 4, 16, 16)).astype(jnp.float32)

    loss = dice_loss(x, t)
    jax.block_until_ready(loss)
    ref = _dice_loss_ref(x, t)
    assert jnp.allclose(loss, ref, rtol=1e-5, atol=1e-6), (loss, ref)

    # Cheap extra checks for the ragged-tail and fully-masked tiny-input paths.
    k2, k3 = jax.random.split(k_t)
    for shape in ((3, 5, 7, 11), (2, 3, 5, 7)):
        xa = jax.random.normal(k2, shape, dtype=jnp.float32)
        ta = jax.random.bernoulli(k3, p=0.5, shape=shape).astype(jnp.float32)
        la = dice_loss(xa, ta)
        jax.block_until_ready(la)
        ra = _dice_loss_ref(xa, ta)
        assert jnp.allclose(la, ra, rtol=1e-5, atol=1e-6), (shape, la, ra)

    print("KERNEL_OK")
</pallas_src>

<mosaic_0001>
module attributes {stable_mosaic.version = 11 : i64} {
  func.func @_dice_partials_kernel(%arg0: i32, %arg1: i32, %arg2: memref<16x128xf32, #tpu.memory_space<vmem>>, %arg3: memref<16x128xf32, #tpu.memory_space<vmem>>, %arg4: memref<1x2x16x128xf32, #tpu.memory_space<vmem>>) attributes {dimension_semantics = [#tpu.dimension_semantics<parallel>, #tpu.dimension_semantics<arbitrary>], iteration_bounds = array<i64: 1, 1>, scalar_prefetch = 0 : i64, scratch_operands = 0 : i64, tpu.core_type = #tpu.core_type<tc>, window_params = [{transform_indices = @transform_0, window_bounds = array<i64: 16, 128>}, {transform_indices = @transform_1, window_bounds = array<i64: 16, 128>}, {transform_indices = @transform_2, window_bounds = array<i64: 1, 2, 16, 128>}]} {
    %c1_i32 = arith.constant 1 : i32
    %0 = arith.muli %arg0, %c1_i32 : i32
    %1 = arith.addi %0, %arg1 : i32
    %c0_i32 = arith.constant 0 : i32
    %2 = arith.cmpi eq, %arg1, %c0_i32 : i32
    %3 = arith.extui %2 : i1 to i32
    %c0_i32_0 = arith.constant 0 : i32
    %4 = arith.cmpi ne, %3, %c0_i32_0 : i32
    scf.if %4 {
      %cst = arith.constant 0.000000e+00 : f32
      %11 = vector.broadcast %cst : f32 to vector<1x2x16x128xf32>
      %c0 = arith.constant 0 : index
      %c0_5 = arith.constant 0 : index
      %c0_6 = arith.constant 0 : index
      %c0_7 = arith.constant 0 : index
      %12 = vector.load %arg4[%c0, %c0_5, %c0_6, %c0_7] : memref<1x2x16x128xf32, #tpu.memory_space<vmem>>, vector<1x2x16x128xf32>
      tpu.vector_store %arg4[%c0, %c0_5, %c0_6, %c0_7], %11 {strides = array<i32>} : memref<1x2x16x128xf32, #tpu.memory_space<vmem>>, vector<1x2x16x128xf32>,
    } else {
    }
    %c1_i32_1 = arith.constant 1 : i32
    %5 = arith.cmpi slt, %1, %c1_i32_1 : i32
    %6 = arith.extui %5 : i1 to i32
    %c0_i32_2 = arith.constant 0 : i32
    %7 = arith.cmpi ne, %6, %c0_i32_2 : i32
    scf.if %7 {
      %c0 = arith.constant 0 : index
      %c0_5 = arith.constant 0 : index
      %11 = vector.load %arg2[%c0, %c0_5] : memref<16x128xf32, #tpu.memory_space<vmem>>, vector<16x128xf32>
      %c0_6 = arith.constant 0 : index
      %c0_7 = arith.constant 0 : index
      %12 = vector.load %arg3[%c0_6, %c0_7] : memref<16x128xf32, #tpu.memory_space<vmem>>, vector<16x128xf32>
      %cst = arith.constant 5.000000e-01 : f32
      %13 = vector.broadcast %cst : f32 to vector<16x128xf32>
      %14 = arith.mulf %13, %11 : vector<16x128xf32>
      %15 = math.tanh %14 : vector<16x128xf32>
      %cst_8 = arith.constant 5.000000e-01 : f32
      %16 = vector.broadcast %cst_8 : f32 to vector<16x128xf32>
      %17 = arith.mulf %16, %15 : vector<16x128xf32>
      %cst_9 = arith.constant 5.000000e-01 : f32
      %18 = vector.broadcast %cst_9 : f32 to vector<16x128xf32>
      %19 = arith.addf %17, %18 : vector<16x128xf32>
      %c0_10 = arith.constant 0 : index
      %c0_11 = arith.constant 0 : index
      %c0_12 = arith.constant 0 : index
      %c0_13 = arith.constant 0 : index
      %20 = vector.load %arg4[%c0_10, %c0_11, %c0_12, %c0_13] : memref<1x2x16x128xf32, #tpu.memory_space<vmem>>, vector<1x1x16x128xf32>
      %21 = vector.shape_cast %20 : vector<1x1x16x128xf32> to vector<16x128xf32>
      %22 = arith.mulf %19, %12 : vector<16x128xf32>
      %23 = vector.shape_cast %22 : vector<16x128xf32> to vector<1x16x128xf32>
      %cst_14 = arith.constant dense<0.000000e+00> : vector<16x128xf32>
      %24 = vector.multi_reduction <add>, %23, %cst_14 [0] : vector<1x16x128xf32> to vector<16x128xf32>
      %25 = arith.addf %21, %24 : vector<16x128xf32>
      %c0_15 = arith.constant 0 : index
      %c0_16 = arith.constant 0 : index
      %c0_17 = arith.constant 0 : index
      %c0_18 = arith.constant 0 : index
      %26 = vector.load %arg4[%c0_15, %c0_16, %c0_17, %c0_18] : memref<1x2x16x128xf32, #tpu.memory_space<vmem>>, vector<1x1x16x128xf32>
      %27 = vector.shape_cast %26 : vector<1x1x16x128xf32> to vector<16x128xf32>
      %28 = vector.shape_cast %25 : vector<16x128xf32> to vector<1x1x16x128xf32>
      tpu.vector_store %arg4[%c0_15, %c0_16, %c0_17, %c0_18], %28 {strides = array<i32>} : memref<1x2x16x128xf32, #tpu.memory_space<vmem>>, vector<1x1x16x128xf32>,
      %c0_19 = arith.constant 0 : index
      %c1 = arith.constant 1 : index
      %c0_20 = arith.constant 0 : index
      %c0_21 = arith.constant 0 : index
      %29 = vector.load %arg4[%c0_19, %c1, %c0_20, %c0_21] : memref<1x2x16x128xf32, #tpu.memory_space<vmem>>, vector<1x1x16x128xf32>
      %30 = vector.shape_cast %29 : vector<1x1x16x128xf32> to vector<16x128xf32>
      %31 = arith.addf %19, %12 : vector<16x128xf32>
      %32 = vector.shape_cast %31 : vector<16x128xf32> to vector<1x16x128xf32>
      %cst_22 = arith.constant dense<0.000000e+00> : vector<16x128xf32>
      %33 = vector.multi_reduction <add>, %32, %cst_22 [0] : vector<1x16x128xf32> to vector<16x128xf32>
      %34 = arith.addf %30, %33 : vector<16x128xf32>
      %c0_23 = arith.constant 0 : index
      %c1_24 = arith.constant 1 : index
      %c0_25 = arith.constant 0 : index
      %c0_26 = arith.constant 0 : index
      %35 = vector.load %arg4[%c0_23, %c1_24, %c0_25, %c0_26] : memref<1x2x16x128xf32, #tpu.memory_space<vmem>>, vector<1x1x16x128xf32>
      %36 = vector.shape_cast %35 : vector<1x1x16x128xf32> to vector<16x128xf32>
      %37 = vector.shape_cast %34 : vector<16x128xf32> to vector<1x1x16x128xf32>
      tpu.vector_store %arg4[%c0_23, %c1_24, %c0_25, %c0_26], %37 {strides = array<i32>} : memref<1x2x16x128xf32, #tpu.memory_space<vmem>>, vector<1x1x16x128xf32>,
    } else {
    }
    %c1_i32_3 = arith.constant 1 : i32
    %8 = arith.cmpi sge, %1, %c1_i32_3 : i32
    %9 = arith.extui %8 : i1 to i32
    %c0_i32_4 = arith.constant 0 : i32
    %10 = arith.cmpi ne, %9, %c0_i32_4 : i32
    scf.if %10 {
      %c0 = arith.constant 0 : index
      %c0_5 = arith.constant 0 : index
      %11 = vector.load %arg2[%c0, %c0_5] : memref<16x128xf32, #tpu.memory_space<vmem>>, vector<16x128xf32>
      %c0_6 = arith.constant 0 : index
      %c0_7 = arith.constant 0 : index
      %12 = vector.load %arg3[%c0_6, %c0_7] : memref<16x128xf32, #tpu.memory_space<vmem>>, vector<16x128xf32>
      %cst = arith.constant 5.000000e-01 : f32
      %13 = vector.broadcast %cst : f32 to vector<16x128xf32>
      %14 = arith.mulf %13, %11 : vector<16x128xf32>
      %15 = math.tanh %14 : vector<16x128xf32>
      %cst_8 = arith.constant 5.000000e-01 : f32
      %16 = vector.broadcast %cst_8 : f32 to vector<16x128xf32>
      %17 = arith.mulf %16, %15 : vector<16x128xf32>
      %cst_9 = arith.constant 5.000000e-01 : f32
      %18 = vector.broadcast %cst_9 : f32 to vector<16x128xf32>
      %19 = arith.addf %17, %18 : vector<16x128xf32>
      %20 = tpu.iota {dimensions = array<i32: 0>} : vector<16x128xi32>
      %21 = tpu.iota {dimensions = array<i32: 1>} : vector<16x128xi32>
      %c2048_i32 = arith.constant 2048 : i32
      %22 = arith.muli %1, %c2048_i32 : i32
      %c2048_i32_10 = arith.constant 2048 : i32
      %23 = arith.subi %c2048_i32_10, %22 : i32
      %c0_i32_11 = arith.constant 0 : i32
      %24 = arith.subi %23, %c0_i32_11 : i32
      %c128_i32 = arith.constant 128 : i32
      %25 = vector.broadcast %c128_i32 : i32 to vector<16x128xi32>
      %26 = arith.muli %20, %25 : vector<16x128xi32>
      %27 = arith.addi %26, %21 : vector<16x128xi32>
      %28 = vector.broadcast %24 : i32 to vector<16x128xi32>
      %29 = arith.cmpi slt, %27, %28 : vector<16x128xi32>
      %cst_12 = arith.constant 0.000000e+00 : f32
      %30 = vector.broadcast %cst_12 : f32 to vector<16x128xf32>
      %31 = arith.select %29, %19, %30 : vector<16x128xi1>, vector<16x128xf32>
      %cst_13 = arith.constant 0.000000e+00 : f32
      %32 = vector.broadcast %cst_13 : f32 to vector<16x128xf32>
      %33 = arith.select %29, %12, %32 : vector<16x128xi1>, vector<16x128xf32>
      %c0_14 = arith.constant 0 : index
      %c0_15 = arith.constant 0 : index
      %c0_16 = arith.constant 0 : index
      %c0_17 = arith.constant 0 : index
      %34 = vector.load %arg4[%c0_14, %c0_15, %c0_16, %c0_17] : memref<1x2x16x128xf32, #tpu.memory_space<vmem>>, vector<1x1x16x128xf32>
      %35 = vector.shape_cast %34 : vector<1x1x16x128xf32> to vector<16x128xf32>
      %36 = arith.mulf %31, %33 : vector<16x128xf32>
      %37 = vector.shape_cast %36 : vector<16x128xf32> to vector<1x16x128xf32>
      %cst_18 = arith.constant dense<0.000000e+00> : vector<16x128xf32>
      %38 = vector.multi_reduction <add>, %37, %cst_18 [0] : vector<1x16x128xf32> to vector<16x128xf32>
      %39 = arith.addf %35, %38 : vector<16x128xf32>
      %c0_19 = arith.constant 0 : index
      %c0_20 = arith.constant 0 : index
      %c0_21 = arith.constant 0 : index
      %c0_22 = arith.constant 0 : index
      %40 = vector.load %arg4[%c0_19, %c0_20, %c0_21, %c0_22] : memref<1x2x16x128xf32, #tpu.memory_space<vmem>>, vector<1x1x16x128xf32>
      %41 = vector.shape_cast %40 : vector<1x1x16x128xf32> to vector<16x128xf32>
      %42 = vector.shape_cast %39 : vector<16x128xf32> to vector<1x1x16x128xf32>
      tpu.vector_store %arg4[%c0_19, %c0_20, %c0_21, %c0_22], %42 {strides = array<i32>} : memref<1x2x16x128xf32, #tpu.memory_space<vmem>>, vector<1x1x16x128xf32>,
      %c0_23 = arith.constant 0 : index
      %c1 = arith.constant 1 : index
      %c0_24 = arith.constant 0 : index
      %c0_25 = arith.constant 0 : index
      %43 = vector.load %arg4[%c0_23, %c1, %c0_24, %c0_25] : memref<1x2x16x128xf32, #tpu.memory_space<vmem>>, vector<1x1x16x128xf32>
      %44 = vector.shape_cast %43 : vector<1x1x16x128xf32> to vector<16x128xf32>
      %45 = arith.addf %31, %33 : vector<16x128xf32>
      %46 = vector.shape_cast %45 : vector<16x128xf32> to vector<1x16x128xf32>
      %cst_26 = arith.constant dense<0.000000e+00> : vector<16x128xf32>
      %47 = vector.multi_reduction <add>, %46, %cst_26 [0] : vector<1x16x128xf32> to vector<16x128xf32>
      %48 = arith.addf %44, %47 : vector<16x128xf32>
      %c0_27 = arith.constant 0 : index
      %c1_28 = arith.constant 1 : index
      %c0_29 = arith.constant 0 : index
      %c0_30 = arith.constant 0 : index
      %49 = vector.load %arg4[%c0_27, %c1_28, %c0_29, %c0_30] : memref<1x2x16x128xf32, #tpu.memory_space<vmem>>, vector<1x1x16x128xf32>
      %50 = vector.shape_cast %49 : vector<1x1x16x128xf32> to vector<16x128xf32>
      %51 = vector.shape_cast %48 : vector<16x128xf32> to vector<1x1x16x128xf32>
      tpu.vector_store %arg4[%c0_27, %c1_28, %c0_29, %c0_30], %51 {strides = array<i32>} : memref<1x2x16x128xf32, #tpu.memory_space<vmem>>, vector<1x1x16x128xf32>,
    } else {
    }
    return
  }
  func.func @transform_0(%arg0: i32, %arg1: i32) -> (i32, i32) {
    %c1_i32 = arith.constant 1 : i32
    %0 = arith.muli %arg0, %c1_i32 : i32
    %1 = arith.addi %0, %arg1 : i32
    %c0_i32 = arith.constant 0 : i32
    %2 = arith.minsi %1, %c0_i32 : i32
    %c0_i32_0 = arith.constant 0 : i32
    %c0_i32_1 = arith.constant 0 : i32
    return %2, %c0_i32_0 : i32, i32
  }
  func.func @transform_1(%arg0: i32, %arg1: i32) -> (i32, i32) {
    %c1_i32 = arith.constant 1 : i32
    %0 = arith.muli %arg0, %c1_i32 : i32
    %1 = arith.addi %0, %arg1 : i32
    %c0_i32 = arith.constant 0 : i32
    %2 = arith.minsi %1, %c0_i32 : i32
    %c0_i32_0 = arith.constant 0 : i32
    %c0_i32_1 = arith.constant 0 : i32
    return %2, %c0_i32_0 : i32, i32
  }
  func.func @transform_2(%arg0: i32, %arg1: i32) -> (i32, i32, i32, i32) {
    %c0_i32 = arith.constant 0 : i32
    %c0_i32_0 = arith.constant 0 : i32
    %c0_i32_1 = arith.constant 0 : i32
    %c0_i32_2 = arith.constant 0 : i32
    return %arg0, %c0_i32, %c0_i32_0, %c0_i32_1 : i32, i32, i32, i32
  }
}

</mosaic_0001>

<bundles_post_ra>
// kernel: tpu_custom_call.1
= control target key start
LH: loop header
LB: loop body
LE: loop exit
PB: predicated region body
PF: predicated region fallthrough
CT: control target
= control target key end

     0   :  { %7 = vsyncpa [#allocation3], 0  ;;  %s297_s0 = inlined_call_operand.hbm [shape: f32[16,128], index: 0, kind: input, shape index: {}]   ;;  %s298_s1 = inlined_call_operand.hbm [shape: f32[16,128], index: 1, kind: input, shape index: {}]   ;;  %s299_s2 = inlined_call_operand.hbm [shape: f32[1,2,16,128], index: 2, kind: output, shape index: {}]  }
   0x1   :  { %8 = vsyncpa [#allocation6], 0 }
   0x2   :  { %9 = vsyncpa [#allocation4], 0  ;;  %s259_s9 = smov [#allocation2]  }
   0x3   :  { %s21_s10 = sshll.u32 %s259_s9, 4  ;;  %s22_s10 = int_to_ptr.vmem [resolvable:$true] %s21_s10 }
   0x4   :  { %s201_s11 = scalar_lea.vmem %s22_s10, 256  ;;  %p206_p1 = scmp.lt.s32.totalorder %s22_s10, %s22_s10 }
   0x5   :  { %p202_p0 = scmp.ne.s32.totalorder %s22_s10, %s201_s11  ;;  %p207_p2 = scmp.lt.s32.totalorder %s201_s11, %s201_s11 }
   0x7   :  { %p208_p3 = por %p207_p2, %p206_p1 }
   0x9   :  { %p209_p4 = pnand %p208_p3, %p202_p0 }
   0xb   :  { %212 = shalt.err (!%p209_p4)
}
   0xc   :  { %s260_s12 = smov 128   ;;  %s261_s13 = smov 8  }
   0xd   :  { %27 = dma.hbm_to_vmem [thread:$0]  %s297_s0, 256, %s22_s10, [#allocation3], %s260_s12, %s260_s12, %s261_s13  }
   0xe   :  { %s262_s16 = smov [#allocation5]  }
   0xf   :  { %s39_s17 = sshll.u32 %s262_s16, 4  ;;  %s40_s17 = int_to_ptr.vmem [resolvable:$true] %s39_s17 }
  0x10   :  { %s221_s18 = scalar_lea.vmem %s40_s17, 256  ;;  %p226_p6 = scmp.lt.s32.totalorder %s40_s17, %s40_s17 }
  0x11   :  { %p222_p5 = scmp.ne.s32.totalorder %s40_s17, %s221_s18  ;;  %p227_p7 = scmp.lt.s32.totalorder %s221_s18, %s221_s18 }
  0x13   :  { %p228_p8 = por %p227_p7, %p226_p6 }
  0x15   :  { %p229_p9 = pnand %p228_p8, %p222_p5 }
  0x17   :  { %232 = shalt.err (!%p229_p9)
}
  0x18   :  { %45 = dma.hbm_to_vmem [thread:$0]  %s298_s1, 256, %s40_s17, [#allocation6], %s260_s12, %s260_s12, %s261_s13  }
  0x19   :  { %253 = dma.done.wait [#allocation3], 256  }
  0x1a   :  { %254 = vsyncadd [#allocation3], 4294967040 }
  0x1b   :  { %255 = dma.done.wait [#allocation6], 256  }
  0x1c   :  { %256 = vsyncadd [#allocation6], 4294967040  ;;  %v73_v0 = vld [vmem:[#allocation2] sm:$0xff]  ;;  %v74_v1 = vld [vmem:[#allocation2 + $0x8] sm:$0xff]  ;;  %s263_s0 = smov [#allocation7]  }
  0x1d   :  { %v77_v2 = vmul.f32 0.5, %v73_v0  ;;  %v78_v3 = vmul.f32 0.5, %v74_v1  ;;  %v75_v7 = vld [vmem:[#allocation5] sm:$0xff]  ;;  %v76_v10 = vld [vmem:[#allocation5 + $0x8] sm:$0xff]  ;;  %s166_s1 = sshll.u32 %s263_s0, 4  ;;  %s167_s1 = int_to_ptr.vmem [resolvable:$true] %s166_s1 }
  0x1e   :  { %s233_s21 = scalar_lea.vmem %s167_s1, 512  ;;  %p238_p11 = scmp.lt.s32.totalorder %s167_s1, %s167_s1 }
  0x1f   :  { %189 = vtanh.f32 %v77_v2  ;;  %p234_p10 = scmp.ne.s32.totalorder %s167_s1, %s233_s21  ;;  %p239_p12 = scmp.lt.s32.totalorder %s233_s21, %s233_s21 }
  0x20   :  { %191 = vtanh.f32 %v78_v3 }
  0x21   :  { %p240_p13 = por %p239_p12, %p238_p11 }
  0x23   :  { %p241_p0 = pnand %p240_p13, %p234_p10 }
  0x2c   :  { %v190_v4 = vpop.eup %189 }
  0x2d   :  { %v192_v5 = vpop.eup %191  ;;  %v81_v6 = vmul.f32 0.5, %v190_v4 }
  0x2e   :  { %v82_v8 = vmul.f32 0.5, %v192_v5 }
  0x2f   :  { %v83_v9 = vadd.f32 0.5, %v81_v6 }
  0x30   :  { %v84_v11 = vadd.f32 0.5, %v82_v8 }
  0x31   :  { %v87_v12 = vmul.f32 %v83_v9, %v75_v7  ;;  %v98_v13 = vadd.f32 %v83_v9, %v75_v7 }
  0x32   :  { %v88_v14 = vmul.f32 %v84_v11, %v76_v10  ;;  %v99_v15 = vadd.f32 %v84_v11, %v76_v10 }
  0x33   :  { %93 = vst [vmem:[#allocation7] sm:$0xff] %v87_v12  ;;  %104 = vst [vmem:[#allocation7 + $0x10] sm:$0xff] %v98_v13 }
  0x34   :  { %94 = vst [vmem:[#allocation7 + $0x8] sm:$0xff] %v88_v14  ;;  %105 = vst [vmem:[#allocation7 + $0x18] sm:$0xff] %v99_v15 }
  0x35   :  { %244 = shalt.err (!%p241_p0)
}
  0x36   :  { %172 = dma.vmem_to_hbm [thread:$0]  %s167_s1, 512, %s299_s2, [#allocation4], %s260_s12, %s260_s12, %s261_s13  }
  0x37   :  { %257 = dma.done.wait [#allocation4], 512  }
  0x38   :  { %258 = vsyncadd [#allocation4], 4294966784 }
  0x39   :  { %176 = vsyncpa [#allocation3], 1 }
  0x3a   :  { %177 = vsyncpa [#allocation6], 1 }
  0x3b   :  { %178 = vsyncpa [#allocation4], 1 }

</bundles_post_ra>
